<compile_context>
chip_gen: v6e
topology: v6e:2x2x1
jax: 0.10.0
libtpu: 0.0.40
codegen_flags: <defaults>
</compile_context>

<pallas_src>
import functools

import jax
import jax.numpy as jnp
import numpy as np
from jax.experimental import pallas as pl
from jax.experimental.pallas import tpu as pltpu

D_IN = 343       # atom feature dim (Linear(343, 64))
D_HID = 64
D_OUT = 32
D_IN_PAD = 384   # 3 * 128 lanes -> unmasked input loads
D_OUT_PAD = 128  # lane-dense output slab -> unmasked stores


# ---------------------------------------------------------------------------
# Kernel: one row-block of the flattened atom matrix per grid step.
# ---------------------------------------------------------------------------
def target_learner_kernel(x_ref, w1_ref, b1_ref, w2_ref, b2_ref, o_ref,
                          *, compute_dtype):
    f32 = jnp.float32
    x = x_ref[...]                                                   # [R, 384] bf16
    h = jnp.dot(x, w1_ref[...], preferred_element_type=f32) + b1_ref[...]
    h = jnp.maximum(h, 0.0)                                          # ReLU (f32 VPU)
    # TODO(synk): dropout layer = identity (eval mode).
    h = h.astype(compute_dtype)
    o_ref[...] = jnp.dot(h, w2_ref[...], preferred_element_type=f32) + b2_ref[...]


# ---------------------------------------------------------------------------
# Wrapper: flatten rows, pad to lane-friendly shapes, pallas_call, un-pad.
# Weights stored as (in_features, out_features), i.e. transposed vs. PyTorch.
# ---------------------------------------------------------------------------
def target_learner_forward(atom, params, *, block_rows=256,
                           compute_dtype=jnp.bfloat16):
    assert atom.shape[-1] == D_IN
    lead = atom.shape[:-1]
    x2d = atom.reshape(-1, D_IN)
    n = x2d.shape[0]

    rows_aligned = ((n + 7) // 8) * 8          # sublane-aligned row count
    blk = min(block_rows, rows_aligned)        # block rows (multiple of 8)
    n_pad = ((n + blk - 1) // blk) * blk
    grid = (n_pad // blk,)

    x = jnp.pad(x2d, ((0, n_pad - n), (0, D_IN_PAD - D_IN))).astype(compute_dtype)
    w1 = jnp.pad(params["w1"], ((0, D_IN_PAD - D_IN), (0, 0))).astype(compute_dtype)
    b1 = params["b1"].reshape(1, D_HID).astype(jnp.float32)
    w2 = jnp.pad(params["w2"], ((0, 0), (0, D_OUT_PAD - D_OUT))).astype(compute_dtype)
    b2 = jnp.pad(params["b2"], (0, D_OUT_PAD - D_OUT)).reshape(1, D_OUT_PAD)
    b2 = b2.astype(jnp.float32)

    isz = jnp.dtype(compute_dtype).itemsize
    cost = pl.CostEstimate(
        flops=2 * n_pad * (D_IN_PAD * D_HID + D_HID * D_OUT_PAD),
        transcendentals=0,
        bytes_accessed=(x.size * isz + w1.size * isz + w2.size * isz
                        + b1.size * 4 + b2.size * 4 + n_pad * D_OUT_PAD * 4),
    )

    out = pl.pallas_call(
        functools.partial(target_learner_kernel, compute_dtype=compute_dtype),
        grid=grid,
        in_specs=[
            pl.BlockSpec((blk, D_IN_PAD), lambda i: (i, 0)),        # atom rows
            pl.BlockSpec((D_IN_PAD, D_HID), lambda i: (0, 0)),      # w1 (resident)
            pl.BlockSpec((1, D_HID), lambda i: (0, 0)),             # b1
            pl.BlockSpec((D_HID, D_OUT_PAD), lambda i: (0, 0)),     # w2 (resident)
            pl.BlockSpec((1, D_OUT_PAD), lambda i: (0, 0)),         # b2
        ],
        out_specs=pl.BlockSpec((blk, D_OUT_PAD), lambda i: (i, 0)),
        out_shape=jax.ShapeDtypeStruct((n_pad, D_OUT_PAD), jnp.float32),
        compiler_params=pltpu.CompilerParams(dimension_semantics=("parallel",)),
        cost_estimate=cost,
    )(x, w1, b1, w2, b2)

    return out[:n, :D_OUT].reshape(*lead, D_OUT)


# ---------------------------------------------------------------------------
# Pure-JAX reference. compute_dtype=bf16 emulates the kernel's operand
# quantization (f32 accumulation); compute_dtype=f32 is the "true" module.
# ---------------------------------------------------------------------------
def target_learner_reference(atom, params, compute_dtype=jnp.float32):
    hp = jax.lax.Precision.HIGHEST
    f32 = jnp.float32
    x = atom.astype(compute_dtype)
    w1 = params["w1"].astype(compute_dtype)
    w2 = params["w2"].astype(compute_dtype)
    h = jnp.dot(x, w1, precision=hp, preferred_element_type=f32) + params["b1"]
    h = jax.nn.relu(h).astype(compute_dtype)
    return jnp.dot(h, w2, precision=hp, preferred_element_type=f32) + params["b2"]


# ---------------------------------------------------------------------------
# Deterministic init (xavier_normal_ weights, PyTorch-style uniform biases).
# ---------------------------------------------------------------------------
def init_params(key):
    def xavier_normal(k, fan_in, fan_out):
        std = (2.0 / (fan_in + fan_out)) ** 0.5
        return std * jax.random.normal(k, (fan_in, fan_out), dtype=jnp.float32)

    k1, k2, k3, k4 = jax.random.split(key, 4)
    return {
        "w1": xavier_normal(k1, D_IN, D_HID),
        "b1": jax.random.uniform(k2, (D_HID,), jnp.float32,
                                 -1.0 / D_IN ** 0.5, 1.0 / D_IN ** 0.5),
        "w2": xavier_normal(k3, D_HID, D_OUT),
        "b2": jax.random.uniform(k4, (D_OUT,), jnp.float32,
                                 -1.0 / D_HID ** 0.5, 1.0 / D_HID ** 0.5),
    }


if __name__ == "__main__":
    key = jax.random.PRNGKey(0)
    k_atom, k_atom2, k_par = jax.random.split(key, 3)
    params = init_params(k_par)

    # Case 1: small 3-D input (batch=2, 8 atoms each) -> single-block grid.
    atom = jax.random.normal(k_atom, (2, 8, D_IN), dtype=jnp.float32)
    out = jax.block_until_ready(target_learner_forward(atom, params))
    assert out.shape == (2, 8, D_OUT), out.shape

    ref_q = target_learner_reference(atom, params, compute_dtype=jnp.bfloat16)
    ref_f = target_learner_reference(atom, params, compute_dtype=jnp.float32)
    # Tight check vs. bf16-emulated reference (kernel math is exact modulo
    # accumulation order), loose check vs. true f32 module (bf16 quantization).
    np.testing.assert_allclose(np.asarray(out), np.asarray(ref_q),
                               rtol=1e-3, atol=1e-3)
    np.testing.assert_allclose(np.asarray(out), np.asarray(ref_f),
                               rtol=5e-2, atol=5e-2)

    # Case 2: 2-D input exercising multi-block grid + row padding (600 -> 3x256).
    atom2 = jax.random.normal(k_atom2, (600, D_IN), dtype=jnp.float32)
    out2 = jax.block_until_ready(target_learner_forward(atom2, params))
    assert out2.shape == (600, D_OUT), out2.shape
    ref2_q = target_learner_reference(atom2, params, compute_dtype=jnp.bfloat16)
    np.testing.assert_allclose(np.asarray(out2), np.asarray(ref2_q),
                               rtol=1e-3, atol=1e-3)

    print("KERNEL_OK")
</pallas_src>

<mosaic_0001>
module attributes {stable_mosaic.version = 11 : i64} {
  func.func @target_learner_kernel(%arg0: i32, %arg1: memref<16x384xbf16, #tpu.memory_space<vmem>>, %arg2: memref<384x64xbf16, #tpu.memory_space<vmem>>, %arg3: memref<1x64xf32, #tpu.memory_space<vmem>>, %arg4: memref<64x128xbf16, #tpu.memory_space<vmem>>, %arg5: memref<1x128xf32, #tpu.memory_space<vmem>>, %arg6: memref<16x128xf32, #tpu.memory_space<vmem>>) attributes {dimension_semantics = [#tpu.dimension_semantics<parallel>], iteration_bounds = array<i64: 1>, scalar_prefetch = 0 : i64, scratch_operands = 0 : i64, tpu.core_type = #tpu.core_type<tc>, window_params = [{transform_indices = @transform_0, window_bounds = array<i64: 16, 384>}, {pipeline_mode = #tpu.pipeline_mode<synchronous>, transform_indices = @transform_1, window_bounds = array<i64: 384, 64>}, {pipeline_mode = #tpu.pipeline_mode<synchronous>, transform_indices = @transform_2, window_bounds = array<i64: 1, 64>}, {pipeline_mode = #tpu.pipeline_mode<synchronous>, transform_indices = @transform_3, window_bounds = array<i64: 64, 128>}, {pipeline_mode = #tpu.pipeline_mode<synchronous>, transform_indices = @transform_4, window_bounds = array<i64: 1, 128>}, {transform_indices = @transform_5, window_bounds = array<i64: 16, 128>}]} {
    %c0 = arith.constant 0 : index
    %c0_0 = arith.constant 0 : index
    %0 = vector.load %arg1[%c0, %c0_0] : memref<16x384xbf16, #tpu.memory_space<vmem>>, vector<16x384xbf16>
    %c0_1 = arith.constant 0 : index
    %c0_2 = arith.constant 0 : index
    %1 = vector.load %arg2[%c0_1, %c0_2] : memref<384x64xbf16, #tpu.memory_space<vmem>>, vector<384x64xbf16>
    %cst = arith.constant dense<0.000000e+00> : vector<16x64xf32>
    %2 = tpu.matmul %0, %1, %cst {dimension_numbers = #tpu.dot_dimension_numbers<[1], [0], [0], [1], [0, 0, 1, 1], [], []>} : vector<16x384xbf16>, vector<384x64xbf16>, vector<16x64xf32> -> vector<16x64xf32>
    %c0_3 = arith.constant 0 : index
    %c0_4 = arith.constant 0 : index
    %3 = vector.load %arg3[%c0_3, %c0_4] : memref<1x64xf32, #tpu.memory_space<vmem>>, vector<1x64xf32>
    %4 = vector.broadcast %3 : vector<1x64xf32> to vector<16x64xf32>
    %5 = arith.addf %2, %4 : vector<16x64xf32>
    %cst_5 = arith.constant 0.000000e+00 : f32
    %6 = vector.broadcast %cst_5 : f32 to vector<16x64xf32>
    %7 = arith.maximumf %5, %6 : vector<16x64xf32>
    %8 = arith.truncf %7 : vector<16x64xf32> to vector<16x64xbf16>
    %c0_6 = arith.constant 0 : index
    %c0_7 = arith.constant 0 : index
    %9 = vector.load %arg4[%c0_6, %c0_7] : memref<64x128xbf16, #tpu.memory_space<vmem>>, vector<64x128xbf16>
    %cst_8 = arith.constant dense<0.000000e+00> : vector<16x128xf32>
    %10 = tpu.matmul %8, %9, %cst_8 {dimension_numbers = #tpu.dot_dimension_numbers<[1], [0], [0], [1], [0, 0, 1, 1], [], []>} : vector<16x64xbf16>, vector<64x128xbf16>, vector<16x128xf32> -> vector<16x128xf32>
    %c0_9 = arith.constant 0 : index
    %c0_10 = arith.constant 0 : index
    %11 = vector.load %arg5[%c0_9, %c0_10] : memref<1x128xf32, #tpu.memory_space<vmem>>, vector<1x128xf32>
    %12 = vector.broadcast %11 : vector<1x128xf32> to vector<16x128xf32>
    %13 = arith.addf %10, %12 : vector<16x128xf32>
    %c0_11 = arith.constant 0 : index
    %c0_12 = arith.constant 0 : index
    %14 = vector.load %arg6[%c0_11, %c0_12] : memref<16x128xf32, #tpu.memory_space<vmem>>, vector<16x128xf32>
    tpu.vector_store %arg6[%c0_11, %c0_12], %13 {strides = array<i32>} : memref<16x128xf32, #tpu.memory_space<vmem>>, vector<16x128xf32>,
    return
  }
  func.func @transform_0(%arg0: i32) -> (i32, i32) {
    %c0_i32 = arith.constant 0 : i32
    %c0_i32_0 = arith.constant 0 : i32
    return %arg0, %c0_i32 : i32, i32
  }
  func.func @transform_1(%arg0: i32) -> (i32, i32) {
    %c0_i32 = arith.constant 0 : i32
    %c0_i32_0 = arith.constant 0 : i32
    %c0_i32_1 = arith.constant 0 : i32
    return %c0_i32, %c0_i32_0 : i32, i32
  }
  func.func @transform_2(%arg0: i32) -> (i32, i32) {
    %c0_i32 = arith.constant 0 : i32
    %c0_i32_0 = arith.constant 0 : i32
    %c0_i32_1 = arith.constant 0 : i32
    return %c0_i32, %c0_i32_0 : i32, i32
  }
  func.func @transform_3(%arg0: i32) -> (i32, i32) {
    %c0_i32 = arith.constant 0 : i32
    %c0_i32_0 = arith.constant 0 : i32
    %c0_i32_1 = arith.constant 0 : i32
    return %c0_i32, %c0_i32_0 : i32, i32
  }
  func.func @transform_4(%arg0: i32) -> (i32, i32) {
    %c0_i32 = arith.constant 0 : i32
    %c0_i32_0 = arith.constant 0 : i32
    %c0_i32_1 = arith.constant 0 : i32
    return %c0_i32, %c0_i32_0 : i32, i32
  }
  func.func @transform_5(%arg0: i32) -> (i32, i32) {
    %c0_i32 = arith.constant 0 : i32
    %c0_i32_0 = arith.constant 0 : i32
    return %arg0, %c0_i32 : i32, i32
  }
}

</mosaic_0001>

<bundles_post_ra>
// kernel: tpu_custom_call.1
= control target key start
LH: loop header
LB: loop body
LE: loop exit
PB: predicated region body
PF: predicated region fallthrough
CT: control target
= control target key end

     0   :  { %v589_v1 = vmov 0.0   ;;  %vm590_vm0 = vmmov 0   ;;  %s742_s0 = inlined_call_operand.vmem [shape: bf16[16,384], index: 0, kind: input, shape index: {}]   ;;  %s743_s1 = inlined_call_operand.vmem [shape: bf16[384,64], index: 1, kind: input, shape index: {}]   ;;  %s744_s2 = inlined_call_operand.vmem [shape: f32[1,64], index: 2, kind: input, shape index: {}]   ;;  %s745_s3 = inlined_call_operand.vmem [shape: bf16[64,128], index: 3, kind: input, shape index: {}]   ;;  %s746_s4 = inlined_call_operand.vmem [shape: f32[1,128], index: 4, kind: input, shape index: {}]   ;;  %s747_s5 = inlined_call_operand.hbm [shape: f32[16,128], index: 5, kind: output, shape index: {}]  }
   0x1   :  { %v535_v0 = vld [vmem:[%s743_s1 + $0x78] sm:$0xff]   ;;  %498 = vmatprep.subr.bf16.mxu1 %v589_v1  ;;  %514 = vmatprep.mubr.msk.bf16.mxu1 %vm590_vm0, %v589_v1  ;;  %v538_v4 = vld [vmem:[%s743_s1 + $0x70] sm:$0xff]   ;;  %v541_v7 = vld [vmem:[%s743_s1 + $0x68] sm:$0xff]  }
   0x2   :  { %v536_v2 = vld [vmem:[%s743_s1 + $0x38] sm:$0xff]   ;;  %462 = vmatprep.subr.bf16.mxu0 %v535_v0  ;;  %v539_v5 = vld [vmem:[%s743_s1 + $0x30] sm:$0xff]   ;;  %v542_v8 = vld [vmem:[%s743_s1 + $0x28] sm:$0xff]  }
   0x3   :  { %v537_v3 = vld [vmem:[%s743_s1 + $0xb8] sm:$0xff]   ;;  %463 = vmatpush3.bf16.msra.mxu0 %v536_v2  ;;  %v540_v6 = vld [vmem:[%s743_s1 + $0xb0] sm:$0xff]   ;;  %v543_v9 = vld [vmem:[%s743_s1 + $0xa8] sm:$0xff]  }
   0x4   :  { %499 = vmatpush3.bf16.msra.mxu1 %v537_v3  ;;  %464 = vmatprep.subr.bf16.mxu0 %v538_v4  ;;  %v544_v10 = vld [vmem:[%s743_s1 + $0x60] sm:$0xff]   ;;  %v547_v13 = vld [vmem:[%s743_s1 + $0x58] sm:$0xff]   ;;  %v550_v16 = vld [vmem:[%s743_s1 + $0x50] sm:$0xff]  }
   0x5   :  { %500 = vmatprep.subr.bf16.mxu1 %v589_v1  ;;  %v545_v11 = vld [vmem:[%s743_s1 + $0x20] sm:$0xff]   ;;  %v548_v14 = vld [vmem:[%s743_s1 + $0x18] sm:$0xff]   ;;  %v551_v17 = vld [vmem:[%s743_s1 + $0x10] sm:$0xff]  }
   0x6   :  { %v546_v12 = vld [vmem:[%s743_s1 + $0xa0] sm:$0xff]   ;;  %v549_v15 = vld [vmem:[%s743_s1 + $0x98] sm:$0xff]   ;;  %v552_v18 = vld [vmem:[%s743_s1 + $0x90] sm:$0xff]  }
   0x7   :  { %465 = vmatpush3.bf16.msra.mxu0 %v539_v5  ;;  %v553_v19 = vld [vmem:[%s743_s1 + $0x48] sm:$0xff]   ;;  %v556_v22 = vld [vmem:[%s743_s1 + $0x40] sm:$0xff]  }
   0x8   :  { %501 = vmatpush3.bf16.msra.mxu1 %v540_v6  ;;  %466 = vmatprep.subr.bf16.mxu0 %v541_v7  ;;  %v554_v20 = vld [vmem:[%s743_s1 + $0x8] sm:$0xff]   ;;  %v557_v23 = vld [vmem:[%s743_s1] sm:$0xff]  }
   0x9   :  { %502 = vmatprep.subr.bf16.mxu1 %v589_v1  ;;  %v555_v21 = vld [vmem:[%s743_s1 + $0x88] sm:$0xff]   ;;  %v561_v24 = vld [vmem:[%s742_s0 + $0x4] ss:$12 sps:$4 sm:$0xff]  }
   0xa   :  { %v558_v25 = vld [vmem:[%s743_s1 + $0x80] sm:$0xff]   ;;  %273 = vmatprep.mubr.bf16.mxu0 %v561_v24 }
   0xb   :  { %467 = vmatpush3.bf16.msra.mxu0 %v542_v8 }
   0xc   :  { %503 = vmatpush3.bf16.msra.mxu1 %v543_v9  ;;  %468 = vmatprep.subr.bf16.mxu0 %v544_v10 }
   0xd   :  { %504 = vmatprep.subr.bf16.mxu1 %v589_v1 }
   0xf   :  { %469 = vmatpush3.bf16.msra.mxu0 %v545_v11 }
  0x10   :  { %505 = vmatpush3.bf16.msra.mxu1 %v546_v12  ;;  %470 = vmatprep.subr.bf16.mxu0 %v547_v13 }
  0x11   :  { %506 = vmatprep.subr.bf16.mxu1 %v589_v1 }
  0x13   :  { %471 = vmatpush3.bf16.msra.mxu0 %v548_v14 }
  0x14   :  { %507 = vmatpush3.bf16.msra.mxu1 %v549_v15  ;;  %472 = vmatprep.subr.bf16.mxu0 %v550_v16 }
  0x15   :  { %508 = vmatprep.subr.bf16.mxu1 %v589_v1 }
  0x17   :  { %473 = vmatpush3.bf16.msra.mxu0 %v551_v17 }
  0x18   :  { %509 = vmatpush3.bf16.msra.mxu1 %v552_v18  ;;  %474 = vmatprep.subr.bf16.mxu0 %v553_v19 }
  0x19   :  { %510 = vmatprep.subr.bf16.mxu1 %v589_v1 }
  0x1b   :  { %475 = vmatpush3.bf16.msra.mxu0 %v554_v20 }
  0x1c   :  { %511 = vmatpush3.bf16.msra.mxu1 %v555_v21  ;;  %476 = vmatprep.subr.bf16.mxu0 %v556_v22 }
  0x1d   :  { %512 = vmatprep.subr.bf16.mxu1 %v589_v1 }
  0x1e   :  { %10 = vsyncpa [#allocation3], 0  ;;  %v559_v26 = vld [vmem:[%s742_s0] ss:$12 sps:$4 sm:$0xff]   ;;  %v562_v27 = vld [vmem:[%s742_s0 + $0x8] ss:$12 sps:$4 sm:$0xff]  }
  0x1f   :  { %477 = vmatpush3.bf16.msra.mxu0 %v557_v23  ;;  %v563_v28 = vld [vmem:[%s745_s3 + $0x18] sm:$0xff]   ;;  %v564_v29 = vld [vmem:[%s745_s3 + $0x10] sm:$0xff]   ;;  %v565_v30 = vld [vmem:[%s745_s3 + $0x8] sm:$0xff]   ;;  %vm365_vm1 = vcmask 523264  }
  0x20   :  { %513 = vmatpush3.bf16.msra.mxu1 %v558_v25  ;;  %518 = vmatprep.subr.bf16.mxu0 %v589_v1  ;;  %v566_v31 = vld [vmem:[%s745_s3] sm:$0xff]  }
  0x21   :  { %v428_v34 = vld [vmem:[%s744_s2] ss:$0 sm:$0xff]  ;;  %s591_s2 = smov [#allocation2]  }
  0x22   :  { %274 = vmatmul.mubr.bf16.vlgmr.msra.gmra.mxu0 %v559_v26  ;;  %v456_v50 = vld [vmem:[%s746_s4] ss:$0 sm:$0xff]  ;;  %s417_s6 = sshll.u32 %s591_s2, 4  ;;  %s418_s6 = int_to_ptr.vmem [resolvable:$true] %s417_s6 }
  0x23   :  { %515 = vmatmul.mubr.bf16.vlgmr.msra.gmra.mxu1 %v562_v27  ;;  %526 = vmatprep.mubr.msk.bf16.mxu0 %vm590_vm0, %v589_v1  ;;  %s567_s7 = scalar_lea.vmem %s418_s6, 256  ;;  %p572_p1 = scmp.lt.s32.totalorder %s418_s6, %s418_s6 }
  0x24   :  { %519 = vmatpush3.bf16.msra.mxu0 %v563_v28  ;;  %p568_p0 = scmp.ne.s32.totalorder %s418_s6, %s567_s7  ;;  %p573_p2 = scmp.lt.s32.totalorder %s567_s7, %s567_s7 }
  0x25   :  { %520 = vmatprep.subr.bf16.mxu0 %v589_v1 }
  0x26   :  { %p574_p3 = por %p573_p2, %p572_p1 }
  0x28   :  { %521 = vmatpush3.bf16.msra.mxu0 %v564_v29  ;;  %p575_p4 = pnand %p574_p3, %p568_p0 }
  0x29   :  { %522 = vmatprep.subr.bf16.mxu0 %v589_v1 }
  0x2c   :  { %523 = vmatpush3.bf16.msra.mxu0 %v565_v30 }
  0x2d   :  { %524 = vmatprep.subr.bf16.mxu0 %v589_v1 }
  0x30   :  { %525 = vmatpush3.bf16.msra.mxu0 %v566_v31 }
  0xe2   :  { %v478_v32 = vpop.f32.mrf.mxu0 }
  0xe3   :  { %v316_v33 = vpop.f32.mrf.mxu1 }
  0xe4   :  { %v479_v35 = vpop.f32.mrf.mxu0 }
  0xe5   :  { %v480_v36 = vadd.f32 %v479_v35, %v478_v32  ;;  %v516_v37 = vpop.f32.mrf.mxu1 }
  0xe6   :  { %v481_v38 = vpop.f32.mrf.mxu0 }
  0xe7   :  { %v276_v39 = vadd.f32 %v480_v36, %v428_v34  ;;  %v319_v40 = vpop.f32.mrf.mxu1 }
  0xe8   :  { %v482_v41 = vpop.f32.mrf.mxu0 }
  0xe9   :  { %v483_v42 = vadd.f32 %v482_v41, %v481_v38  ;;  %v517_v43 = vpop.f32.mrf.mxu1  ;;  %v317_v44 = vadd.f32 %v316_v33, %v276_v39 }
  0xeb   :  { %v279_v45 = vadd.f32 %v483_v42, %v428_v34  ;;  %v323_v47 = vmax.f32 %v317_v44, 0.0 }
  0xed   :  { %v320_v46 = vadd.f32 %v319_v40, %v279_v45 }
  0xef   :  { %v324_v48 = vmax.f32 %v320_v46, 0.0 }
  0xf1   :  { %v325_v49 = vpack.c.bf16 %v324_v48, %v323_v47 }
  0xf3   :  { %527 = vmatmul.mubr.msk.bf16.vlgmr.msra.gmra.mxu0 %vm365_vm1, %v325_v49 }
 0x1b3   :  { %v403_v51 = vpop.f32.mrf.mxu0 }
 0x1b4   :  { %v404_v52 = vadd.f32 %v456_v50, %v403_v51 }
 0x1b5   :  { %v528_v53 = vpop.f32.mrf.mxu0 }
 0x1b6   :  { %410 = vst [vmem:[#allocation2] sm:$0xff] %v404_v52 }
 0x1b7   :  { %v406_v54 = vpop.f32.mrf.mxu0 }
 0x1b8   :  { %v407_v55 = vadd.f32 %v456_v50, %v406_v54 }
 0x1b9   :  { %v529_v56 = vpop.f32.mrf.mxu0 }
 0x1ba   :  { %411 = vst [vmem:[#allocation2 + $0x8] sm:$0xff] %v407_v55 }
 0x1bb   :  { %578 = shalt.err (!%p575_p4)
}
 0x1bc   :  { %s592_s8 = smov 128   ;;  %s593_s4 = smov 8  }
 0x1bd   :  { %423 = dma.vmem_to_hbm [thread:$0]  %s418_s6, 256, %s747_s5, [#allocation3], %s592_s8, %s592_s8, %s593_s4  }
 0x1be   :  { %587 = dma.done.wait [#allocation3], 256  }
 0x1bf   :  { %588 = vsyncadd [#allocation3], 4294967040 }
 0x1c0   :  { %427 = vsyncpa [#allocation3], 1 }

</bundles_post_ra>
